<compile_context>
chip_gen: v7x
topology: tpu7x:2x2x1
jax: 0.10.0
libtpu: 0.0.40
codegen_flags: <defaults>
</compile_context>

<pallas_src>
import jax
import jax.numpy as jnp
import numpy as np
from jax.experimental import pallas as pl
from jax.experimental.pallas import tpu as pltpu


def _round_up(x, m):
    return (x + m - 1) // m * m


# --------------------------------------------------------------------------
# One-time weight preparation (call once; result is reused for every forward)
# --------------------------------------------------------------------------
def prepare_params(p):
    """Gate-reorder, fc-fold and pack all constants into a single (rows, 4H) array."""
    H = p["whh_e_T"].shape[0]
    E = p["wih_e_T"].shape[0]
    G = 4 * H

    w_prev = p["wih_d_T"][0:1, :]                       # (1,4H) weight for prev pred
    w_fd = p["wih_d_T"][1:2, :]                         # (1,4H) weight for fd input
    # Fold the fc head into the decoder recurrence (exact in f32):
    whh_d_eff = p["whh_d_T"] + p["fc_w"].T * w_prev     # (H,4H)
    b_d_eff = p["b_d"] + p["fc_b"] * w_prev             # (1,4H)
    b_d_delta = p["b_d"] - b_d_eff                      # step-0 bias correction

    # Gate reorder [i,f,g,o] -> [i,f,o,g] so sigmoid covers cols [0:3H], tanh [3H:4H].
    def reord(a):
        return jnp.concatenate([a[:, :2 * H], a[:, 3 * H:4 * H], a[:, 2 * H:3 * H]], axis=1)

    rE, rH = _round_up(E, 8), _round_up(H, 8)
    off = {"wih_e": 0, "whh_e": rE, "whh_d0": rE + rH,
           "whh_de": rE + 2 * rH, "misc": rE + 3 * rH}
    n_rows = rE + 3 * rH + 8

    def put(W, r0, a):
        return W.at[r0:r0 + a.shape[0], :a.shape[1]].set(a)

    W = jnp.zeros((n_rows, G), jnp.float32)
    W = put(W, off["wih_e"], reord(p["wih_e_T"]))
    W = put(W, off["whh_e"], reord(p["whh_e_T"]))
    W = put(W, off["whh_d0"], reord(p["whh_d_T"]))       # decoder step 0 (input pred == 0)
    W = put(W, off["whh_de"], reord(whh_d_eff))          # decoder steps >= 1 (fc folded)
    W = put(W, off["misc"] + 0, reord(p["b_e"]))
    W = put(W, off["misc"] + 1, reord(w_fd))
    W = put(W, off["misc"] + 2, reord(b_d_eff))
    W = put(W, off["misc"] + 3, reord(b_d_delta))
    W = put(W, off["misc"] + 4, p["fc_w"])               # (1,H) in cols [0:H]
    W = put(W, off["misc"] + 5, p["fc_b"])               # (1,1) at col 0

    meta = dict(E=E, H=H, off=off)
    return W, meta


# --------------------------------------------------------------------------
# Kernel
# --------------------------------------------------------------------------
def make_kernel(B_pad, T_ENC, T_OUT, E, H, off):
    o_mi = off["misc"]

    def kernel(enc_ref, fd_ref, w_ref, out_ref, hs_ref):
        sig = jax.nn.sigmoid

        wih_e = w_ref[off["wih_e"]:off["wih_e"] + E, :]
        whh_e = w_ref[off["whh_e"]:off["whh_e"] + H, :]
        whh_d0 = w_ref[off["whh_d0"]:off["whh_d0"] + H, :]
        whh_de = w_ref[off["whh_de"]:off["whh_de"] + H, :]
        b_e = w_ref[o_mi + 0:o_mi + 1, :]
        w_fd = w_ref[o_mi + 1:o_mi + 2, :]
        b_d_eff = w_ref[o_mi + 2:o_mi + 3, :]
        b_d_delta = w_ref[o_mi + 3:o_mi + 4, :]
        fc_w = w_ref[o_mi + 4:o_mi + 5, 0:H]
        fc_b = w_ref[o_mi + 5:o_mi + 6, 0:1]

        def cell(pre, c):
            # Gates laid out [i, f, o | g]: one 3H sigmoid slice, one H tanh slice.
            sg = sig(pre[:, 0:3 * H])
            g = jnp.tanh(pre[:, 3 * H:4 * H])
            i, f, o = sg[:, 0:H], sg[:, H:2 * H], sg[:, 2 * H:3 * H]
            c = f * c + i * g
            h = o * jnp.tanh(c)
            return h, c

        h = jnp.zeros((B_pad, H), jnp.float32)
        c = jnp.zeros((B_pad, H), jnp.float32)

        # ----- encoder: input projection hoisted off the recurrence -----
        x_proj = jnp.dot(enc_ref[...], wih_e,
                         preferred_element_type=jnp.float32) + b_e   # (T_ENC*B_pad, 4H)
        for t in range(T_ENC):
            pre = x_proj[t * B_pad:(t + 1) * B_pad, :] + jnp.dot(
                h, whh_e, preferred_element_type=jnp.float32)
            h, c = cell(pre, c)

        # ----- decoder: fd projection + bias precomputed once, fc head folded -----
        fd_base = fd_ref[...] * w_fd + b_d_eff            # (T_OUT*B_pad, 4H), off-chain
        for t in range(T_OUT):
            base = fd_base[t * B_pad:(t + 1) * B_pad, :]
            if t == 0:
                pre = base + b_d_delta + jnp.dot(h, whh_d0,
                                                 preferred_element_type=jnp.float32)
            else:
                pre = base + jnp.dot(h, whh_de,
                                     preferred_element_type=jnp.float32)
            h, c = cell(pre, c)
            hs_ref[t * B_pad:(t + 1) * B_pad, :] = h      # store off the critical chain

        # ----- rank-1 fc head applied once to all decoder steps -----
        weighted = hs_ref[...] * fc_w                     # (T_OUT*B_pad, H)
        cols = [jnp.sum(weighted[t * B_pad:(t + 1) * B_pad, :], axis=1, keepdims=True)
                for t in range(T_OUT)]
        out_ref[...] = jnp.concatenate(cols, axis=1) + fc_b   # (B_pad, T_OUT)
        # TODO(synk): teacher-forcing branch (targets + host-side torch.rand() coin flip)
        # is stochastic host control flow and is not translated; inference path only.

    return kernel


# --------------------------------------------------------------------------
# Forward wrapper (jitted; per-call work is just pad/transpose of the inputs)
# --------------------------------------------------------------------------
def make_forward(meta):
    E, H, off = meta["E"], meta["H"], meta["off"]

    @jax.jit
    def forward(enc_x, future_fd, W):
        B, T_ENC, _ = enc_x.shape
        T_OUT = future_fd.shape[1]
        B_pad = _round_up(B, 8)   # f32 sublane count -> vreg-aligned per-step slices

        # TODO(synk): at production T_ENC*B, replace this wrapper transpose/pad with a
        # time-tiled grid + BlockSpec index_map (and vmem_limit_bytes for v7x's 64 MiB).
        enc_tm = jnp.transpose(enc_x, (1, 0, 2))
        enc_tm = jnp.pad(enc_tm, ((0, 0), (0, B_pad - B), (0, 0)))
        enc_flat = enc_tm.reshape(T_ENC * B_pad, E)

        fd_tm = jnp.pad(future_fd.T, ((0, 0), (0, B_pad - B)))       # (T_OUT, B_pad)
        fd_col = fd_tm.reshape(T_OUT * B_pad, 1)

        kernel = make_kernel(B_pad, T_ENC, T_OUT, E, H, off)
        out = pl.pallas_call(
            kernel,
            out_shape=jax.ShapeDtypeStruct((B_pad, T_OUT), jnp.float32),
            in_specs=[pl.BlockSpec(memory_space=pltpu.MemorySpace.VMEM)] * 3,
            out_specs=pl.BlockSpec(memory_space=pltpu.MemorySpace.VMEM),
            scratch_shapes=[pltpu.VMEM((T_OUT * B_pad, H), jnp.float32)],
        )(enc_flat, fd_col, W)
        return out[:B]

    return forward


# --------------------------------------------------------------------------
# Parameter init + pure-JAX reference of the torch forward (inference path)
# --------------------------------------------------------------------------
def init_params(key, E, H, dec_in_dim=2, out_dim=1):
    bound = 1.0 / float(np.sqrt(H))
    keys = jax.random.split(key, 10)
    u = lambda kk, shape: jax.random.uniform(kk, shape, jnp.float32, -bound, bound)
    wih_e = u(keys[0], (4 * H, E))
    whh_e = u(keys[1], (4 * H, H))
    bih_e = u(keys[2], (4 * H,))
    bhh_e = u(keys[3], (4 * H,))
    wih_d = u(keys[4], (4 * H, dec_in_dim))
    whh_d = u(keys[5], (4 * H, H))
    bih_d = u(keys[6], (4 * H,))
    bhh_d = u(keys[7], (4 * H,))
    fc_w = u(keys[8], (out_dim, H))
    fc_b = u(keys[9], (out_dim,))
    return dict(
        wih_e_T=wih_e.T, whh_e_T=whh_e.T, b_e=(bih_e + bhh_e)[None, :],
        wih_d_T=wih_d.T, whh_d_T=whh_d.T, b_d=(bih_d + bhh_d)[None, :],
        fc_w=fc_w, fc_b=fc_b[None, :])


def reference_forward(enc_x, fd, p):
    B = enc_x.shape[0]
    H = p["whh_e_T"].shape[0]
    h = jnp.zeros((B, H), jnp.float32)
    c = jnp.zeros((B, H), jnp.float32)

    def step(x, h, c, wihT, whhT, b):
        g = x @ wihT + h @ whhT + b
        i, f, gg, o = jnp.split(g, 4, axis=1)
        c = jax.nn.sigmoid(f) * c + jax.nn.sigmoid(i) * jnp.tanh(gg)
        h = jax.nn.sigmoid(o) * jnp.tanh(c)
        return h, c

    for t in range(enc_x.shape[1]):
        h, c = step(enc_x[:, t, :], h, c, p["wih_e_T"], p["whh_e_T"], p["b_e"])
    dec_in = jnp.zeros((B, 1), jnp.float32)
    outs = []
    for t in range(fd.shape[1]):
        x = jnp.concatenate([dec_in, fd[:, t:t + 1]], axis=1)
        h, c = step(x, h, c, p["wih_d_T"], p["whh_d_T"], p["b_d"])
        pred = h @ p["fc_w"].T + p["fc_b"]
        outs.append(pred)
        dec_in = pred
    return jnp.concatenate(outs, axis=1)


if __name__ == "__main__":
    B, T_ENC, T_OUT, E, H = 2, 5, 3, 16, 32   # encoder_inputs (B,5,E), future_fd (B,3)

    key = jax.random.PRNGKey(0)
    k_params, k_enc, k_fd = jax.random.split(key, 3)
    raw_params = init_params(k_params, E, H)

    W, meta = prepare_params(raw_params)       # one-time weight prep (cached)
    forward = make_forward(meta)

    enc_x = jax.random.normal(k_enc, (B, T_ENC, E), jnp.float32)
    future_fd = jax.random.normal(k_fd, (B, T_OUT), jnp.float32)

    out = jax.block_until_ready(forward(enc_x, future_fd, W))

    ref = reference_forward(enc_x, future_fd, raw_params)
    np.testing.assert_allclose(np.asarray(out), np.asarray(ref), rtol=5e-4, atol=1e-4)

    assert out.shape == (B, T_OUT)
    print("KERNEL_OK")
</pallas_src>

<mosaic_0001>
module attributes {stable_mosaic.version = 11 : i64} {
  func.func @kernel(%arg0: memref<40x16xf32, #tpu.memory_space<vmem>>, %arg1: memref<24x1xf32, #tpu.memory_space<vmem>>, %arg2: memref<120x128xf32, #tpu.memory_space<vmem>>, %arg3: memref<8x3xf32, #tpu.memory_space<vmem>>, %arg4: memref<24x32xf32, #tpu.memory_space<vmem>>) attributes {dimension_semantics = [], scalar_prefetch = 0 : i64, scratch_operands = 1 : i64, tpu.core_type = #tpu.core_type<tc>} {
    %c0 = arith.constant 0 : index
    %c0_0 = arith.constant 0 : index
    %0 = vector.load %arg2[%c0, %c0_0] : memref<120x128xf32, #tpu.memory_space<vmem>>, vector<16x128xf32>
    %c16 = arith.constant 16 : index
    %c0_1 = arith.constant 0 : index
    %1 = vector.load %arg2[%c16, %c0_1] : memref<120x128xf32, #tpu.memory_space<vmem>>, vector<32x128xf32>
    %c48 = arith.constant 48 : index
    %c0_2 = arith.constant 0 : index
    %2 = vector.load %arg2[%c48, %c0_2] : memref<120x128xf32, #tpu.memory_space<vmem>>, vector<32x128xf32>
    %c80 = arith.constant 80 : index
    %c0_3 = arith.constant 0 : index
    %3 = vector.load %arg2[%c80, %c0_3] : memref<120x128xf32, #tpu.memory_space<vmem>>, vector<32x128xf32>
    %c112 = arith.constant 112 : index
    %c0_4 = arith.constant 0 : index
    %4 = vector.load %arg2[%c112, %c0_4] : memref<120x128xf32, #tpu.memory_space<vmem>>, vector<1x128xf32>
    %c113 = arith.constant 113 : index
    %c0_5 = arith.constant 0 : index
    %5 = vector.load %arg2[%c113, %c0_5] : memref<120x128xf32, #tpu.memory_space<vmem>>, vector<1x128xf32>
    %c114 = arith.constant 114 : index
    %c0_6 = arith.constant 0 : index
    %6 = vector.load %arg2[%c114, %c0_6] : memref<120x128xf32, #tpu.memory_space<vmem>>, vector<1x128xf32>
    %c115 = arith.constant 115 : index
    %c0_7 = arith.constant 0 : index
    %7 = vector.load %arg2[%c115, %c0_7] : memref<120x128xf32, #tpu.memory_space<vmem>>, vector<1x128xf32>
    %c116 = arith.constant 116 : index
    %c0_8 = arith.constant 0 : index
    %8 = vector.load %arg2[%c116, %c0_8] : memref<120x128xf32, #tpu.memory_space<vmem>>, vector<1x32xf32>
    %c117 = arith.constant 117 : index
    %c0_9 = arith.constant 0 : index
    %9 = vector.load %arg2[%c117, %c0_9] : memref<120x128xf32, #tpu.memory_space<vmem>>, vector<1x1xf32>
    %cst = arith.constant 0.000000e+00 : f32
    %10 = vector.broadcast %cst : f32 to vector<8x32xf32>
    %cst_10 = arith.constant 0.000000e+00 : f32
    %11 = vector.broadcast %cst_10 : f32 to vector<8x32xf32>
    %c0_11 = arith.constant 0 : index
    %c0_12 = arith.constant 0 : index
    %12 = vector.load %arg0[%c0_11, %c0_12] : memref<40x16xf32, #tpu.memory_space<vmem>>, vector<40x16xf32>
    %cst_13 = arith.constant dense<0.000000e+00> : vector<40x128xf32>
    %13 = tpu.matmul %12, %0, %cst_13 {dimension_numbers = #tpu.dot_dimension_numbers<[1], [0], [0], [1], [0, 0, 1, 1], [], []>} : vector<40x16xf32>, vector<16x128xf32>, vector<40x128xf32> -> vector<40x128xf32>
    %14 = vector.broadcast %4 : vector<1x128xf32> to vector<40x128xf32>
    %15 = arith.addf %13, %14 : vector<40x128xf32>
    %16 = vector.extract_strided_slice %15 {offsets = [0, 0], sizes = [8, 128], strides = [1, 1]} : vector<40x128xf32> to vector<8x128xf32>
    %cst_14 = arith.constant dense<0.000000e+00> : vector<8x128xf32>
    %17 = tpu.matmul %10, %1, %cst_14 {dimension_numbers = #tpu.dot_dimension_numbers<[1], [0], [0], [1], [0, 0, 1, 1], [], []>} : vector<8x32xf32>, vector<32x128xf32>, vector<8x128xf32> -> vector<8x128xf32>
    %18 = arith.addf %16, %17 : vector<8x128xf32>
    %19 = vector.extract_strided_slice %18 {offsets = [0, 0], sizes = [8, 96], strides = [1, 1]} : vector<8x128xf32> to vector<8x96xf32>
    %20 = arith.negf %19 : vector<8x96xf32>
    %21 = math.exp %20 : vector<8x96xf32>
    %cst_15 = arith.constant 1.000000e+00 : f32
    %22 = vector.broadcast %cst_15 : f32 to vector<8x96xf32>
    %23 = arith.addf %22, %21 : vector<8x96xf32>
    %24 = arith.divf %22, %23 : vector<8x96xf32>
    %25 = vector.extract_strided_slice %18 {offsets = [0, 96], sizes = [8, 32], strides = [1, 1]} : vector<8x128xf32> to vector<8x32xf32>
    %26 = math.tanh %25 : vector<8x32xf32>
    %27 = vector.extract_strided_slice %24 {offsets = [0, 0], sizes = [8, 32], strides = [1, 1]} : vector<8x96xf32> to vector<8x32xf32>
    %28 = vector.extract_strided_slice %24 {offsets = [0, 32], sizes = [8, 32], strides = [1, 1]} : vector<8x96xf32> to vector<8x32xf32>
    %29 = vector.extract_strided_slice %24 {offsets = [0, 64], sizes = [8, 32], strides = [1, 1]} : vector<8x96xf32> to vector<8x32xf32>
    %30 = arith.mulf %28, %11 : vector<8x32xf32>
    %31 = arith.mulf %27, %26 : vector<8x32xf32>
    %32 = arith.addf %30, %31 : vector<8x32xf32>
    %33 = math.tanh %32 : vector<8x32xf32>
    %34 = arith.mulf %29, %33 : vector<8x32xf32>
    %35 = vector.extract_strided_slice %15 {offsets = [8, 0], sizes = [8, 128], strides = [1, 1]} : vector<40x128xf32> to vector<8x128xf32>
    %cst_16 = arith.constant dense<0.000000e+00> : vector<8x128xf32>
    %36 = tpu.matmul %34, %1, %cst_16 {dimension_numbers = #tpu.dot_dimension_numbers<[1], [0], [0], [1], [0, 0, 1, 1], [], []>} : vector<8x32xf32>, vector<32x128xf32>, vector<8x128xf32> -> vector<8x128xf32>
    %37 = arith.addf %35, %36 : vector<8x128xf32>
    %38 = vector.extract_strided_slice %37 {offsets = [0, 0], sizes = [8, 96], strides = [1, 1]} : vector<8x128xf32> to vector<8x96xf32>
    %39 = arith.negf %38 : vector<8x96xf32>
    %40 = math.exp %39 : vector<8x96xf32>
    %cst_17 = arith.constant 1.000000e+00 : f32
    %41 = vector.broadcast %cst_17 : f32 to vector<8x96xf32>
    %42 = arith.addf %41, %40 : vector<8x96xf32>
    %43 = arith.divf %41, %42 : vector<8x96xf32>
    %44 = vector.extract_strided_slice %37 {offsets = [0, 96], sizes = [8, 32], strides = [1, 1]} : vector<8x128xf32> to vector<8x32xf32>
    %45 = math.tanh %44 : vector<8x32xf32>
    %46 = vector.extract_strided_slice %43 {offsets = [0, 0], sizes = [8, 32], strides = [1, 1]} : vector<8x96xf32> to vector<8x32xf32>
    %47 = vector.extract_strided_slice %43 {offsets = [0, 32], sizes = [8, 32], strides = [1, 1]} : vector<8x96xf32> to vector<8x32xf32>
    %48 = vector.extract_strided_slice %43 {offsets = [0, 64], sizes = [8, 32], strides = [1, 1]} : vector<8x96xf32> to vector<8x32xf32>
    %49 = arith.mulf %47, %32 : vector<8x32xf32>
    %50 = arith.mulf %46, %45 : vector<8x32xf32>
    %51 = arith.addf %49, %50 : vector<8x32xf32>
    %52 = math.tanh %51 : vector<8x32xf32>
    %53 = arith.mulf %48, %52 : vector<8x32xf32>
    %54 = vector.extract_strided_slice %15 {offsets = [16, 0], sizes = [8, 128], strides = [1, 1]} : vector<40x128xf32> to vector<8x128xf32>
    %cst_18 = arith.constant dense<0.000000e+00> : vector<8x128xf32>
    %55 = tpu.matmul %53, %1, %cst_18 {dimension_numbers = #tpu.dot_dimension_numbers<[1], [0], [0], [1], [0, 0, 1, 1], [], []>} : vector<8x32xf32>, vector<32x128xf32>, vector<8x128xf32> -> vector<8x128xf32>
    %56 = arith.addf %54, %55 : vector<8x128xf32>
    %57 = vector.extract_strided_slice %56 {offsets = [0, 0], sizes = [8, 96], strides = [1, 1]} : vector<8x128xf32> to vector<8x96xf32>
    %58 = arith.negf %57 : vector<8x96xf32>
    %59 = math.exp %58 : vector<8x96xf32>
    %cst_19 = arith.constant 1.000000e+00 : f32
    %60 = vector.broadcast %cst_19 : f32 to vector<8x96xf32>
    %61 = arith.addf %60, %59 : vector<8x96xf32>
    %62 = arith.divf %60, %61 : vector<8x96xf32>
    %63 = vector.extract_strided_slice %56 {offsets = [0, 96], sizes = [8, 32], strides = [1, 1]} : vector<8x128xf32> to vector<8x32xf32>
    %64 = math.tanh %63 : vector<8x32xf32>
    %65 = vector.extract_strided_slice %62 {offsets = [0, 0], sizes = [8, 32], strides = [1, 1]} : vector<8x96xf32> to vector<8x32xf32>
    %66 = vector.extract_strided_slice %62 {offsets = [0, 32], sizes = [8, 32], strides = [1, 1]} : vector<8x96xf32> to vector<8x32xf32>
    %67 = vector.extract_strided_slice %62 {offsets = [0, 64], sizes = [8, 32], strides = [1, 1]} : vector<8x96xf32> to vector<8x32xf32>
    %68 = arith.mulf %66, %51 : vector<8x32xf32>
    %69 = arith.mulf %65, %64 : vector<8x32xf32>
    %70 = arith.addf %68, %69 : vector<8x32xf32>
    %71 = math.tanh %70 : vector<8x32xf32>
    %72 = arith.mulf %67, %71 : vector<8x32xf32>
    %73 = vector.extract_strided_slice %15 {offsets = [24, 0], sizes = [8, 128], strides = [1, 1]} : vector<40x128xf32> to vector<8x128xf32>
    %cst_20 = arith.constant dense<0.000000e+00> : vector<8x128xf32>
    %74 = tpu.matmul %72, %1, %cst_20 {dimension_numbers = #tpu.dot_dimension_numbers<[1], [0], [0], [1], [0, 0, 1, 1], [], []>} : vector<8x32xf32>, vector<32x128xf32>, vector<8x128xf32> -> vector<8x128xf32>
    %75 = arith.addf %73, %74 : vector<8x128xf32>
    %76 = vector.extract_strided_slice %75 {offsets = [0, 0], sizes = [8, 96], strides = [1, 1]} : vector<8x128xf32> to vector<8x96xf32>
    %77 = arith.negf %76 : vector<8x96xf32>
    %78 = math.exp %77 : vector<8x96xf32>
    %cst_21 = arith.constant 1.000000e+00 : f32
    %79 = vector.broadcast %cst_21 : f32 to vector<8x96xf32>
    %80 = arith.addf %79, %78 : vector<8x96xf32>
    %81 = arith.divf %79, %80 : vector<8x96xf32>
    %82 = vector.extract_strided_slice %75 {offsets = [0, 96], sizes = [8, 32], strides = [1, 1]} : vector<8x128xf32> to vector<8x32xf32>
    %83 = math.tanh %82 : vector<8x32xf32>
    %84 = vector.extract_strided_slice %81 {offsets = [0, 0], sizes = [8, 32], strides = [1, 1]} : vector<8x96xf32> to vector<8x32xf32>
    %85 = vector.extract_strided_slice %81 {offsets = [0, 32], sizes = [8, 32], strides = [1, 1]} : vector<8x96xf32> to vector<8x32xf32>
    %86 = vector.extract_strided_slice %81 {offsets = [0, 64], sizes = [8, 32], strides = [1, 1]} : vector<8x96xf32> to vector<8x32xf32>
    %87 = arith.mulf %85, %70 : vector<8x32xf32>
    %88 = arith.mulf %84, %83 : vector<8x32xf32>
    %89 = arith.addf %87, %88 : vector<8x32xf32>
    %90 = math.tanh %89 : vector<8x32xf32>
    %91 = arith.mulf %86, %90 : vector<8x32xf32>
    %92 = vector.extract_strided_slice %15 {offsets = [32, 0], sizes = [8, 128], strides = [1, 1]} : vector<40x128xf32> to vector<8x128xf32>
    %cst_22 = arith.constant dense<0.000000e+00> : vector<8x128xf32>
    %93 = tpu.matmul %91, %1, %cst_22 {dimension_numbers = #tpu.dot_dimension_numbers<[1], [0], [0], [1], [0, 0, 1, 1], [], []>} : vector<8x32xf32>, vector<32x128xf32>, vector<8x128xf32> -> vector<8x128xf32>
    %94 = arith.addf %92, %93 : vector<8x128xf32>
    %95 = vector.extract_strided_slice %94 {offsets = [0, 0], sizes = [8, 96], strides = [1, 1]} : vector<8x128xf32> to vector<8x96xf32>
    %96 = arith.negf %95 : vector<8x96xf32>
    %97 = math.exp %96 : vector<8x96xf32>
    %cst_23 = arith.constant 1.000000e+00 : f32
    %98 = vector.broadcast %cst_23 : f32 to vector<8x96xf32>
    %99 = arith.addf %98, %97 : vector<8x96xf32>
    %100 = arith.divf %98, %99 : vector<8x96xf32>
    %101 = vector.extract_strided_slice %94 {offsets = [0, 96], sizes = [8, 32], strides = [1, 1]} : vector<8x128xf32> to vector<8x32xf32>
    %102 = math.tanh %101 : vector<8x32xf32>
    %103 = vector.extract_strided_slice %100 {offsets = [0, 0], sizes = [8, 32], strides = [1, 1]} : vector<8x96xf32> to vector<8x32xf32>
    %104 = vector.extract_strided_slice %100 {offsets = [0, 32], sizes = [8, 32], strides = [1, 1]} : vector<8x96xf32> to vector<8x32xf32>
    %105 = vector.extract_strided_slice %100 {offsets = [0, 64], sizes = [8, 32], strides = [1, 1]} : vector<8x96xf32> to vector<8x32xf32>
    %106 = arith.mulf %104, %89 : vector<8x32xf32>
    %107 = arith.mulf %103, %102 : vector<8x32xf32>
    %108 = arith.addf %106, %107 : vector<8x32xf32>
    %109 = math.tanh %108 : vector<8x32xf32>
    %110 = arith.mulf %105, %109 : vector<8x32xf32>
    %c0_24 = arith.constant 0 : index
    %c0_25 = arith.constant 0 : index
    %111 = vector.load %arg1[%c0_24, %c0_25] : memref<24x1xf32, #tpu.memory_space<vmem>>, vector<24x1xf32>
    %112 = vector.broadcast %111 : vector<24x1xf32> to vector<24x128xf32>
    %113 = vector.broadcast %5 : vector<1x128xf32> to vector<24x128xf32>
    %114 = arith.mulf %112, %113 : vector<24x128xf32>
    %115 = vector.broadcast %6 : vector<1x128xf32> to vector<24x128xf32>
    %116 = arith.addf %114, %115 : vector<24x128xf32>
    %117 = vector.extract_strided_slice %116 {offsets = [0, 0], sizes = [8, 128], strides = [1, 1]} : vector<24x128xf32> to vector<8x128xf32>
    %118 = vector.broadcast %7 : vector<1x128xf32> to vector<8x128xf32>
    %119 = arith.addf %117, %118 : vector<8x128xf32>
    %cst_26 = arith.constant dense<0.000000e+00> : vector<8x128xf32>
    %120 = tpu.matmul %110, %2, %cst_26 {dimension_numbers = #tpu.dot_dimension_numbers<[1], [0], [0], [1], [0, 0, 1, 1], [], []>} : vector<8x32xf32>, vector<32x128xf32>, vector<8x128xf32> -> vector<8x128xf32>
    %121 = arith.addf %119, %120 : vector<8x128xf32>
    %122 = vector.extract_strided_slice %121 {offsets = [0, 0], sizes = [8, 96], strides = [1, 1]} : vector<8x128xf32> to vector<8x96xf32>
    %123 = arith.negf %122 : vector<8x96xf32>
    %124 = math.exp %123 : vector<8x96xf32>
    %cst_27 = arith.constant 1.000000e+00 : f32
    %125 = vector.broadcast %cst_27 : f32 to vector<8x96xf32>
    %126 = arith.addf %125, %124 : vector<8x96xf32>
    %127 = arith.divf %125, %126 : vector<8x96xf32>
    %128 = vector.extract_strided_slice %121 {offsets = [0, 96], sizes = [8, 32], strides = [1, 1]} : vector<8x128xf32> to vector<8x32xf32>
    %129 = math.tanh %128 : vector<8x32xf32>
    %130 = vector.extract_strided_slice %127 {offsets = [0, 0], sizes = [8, 32], strides = [1, 1]} : vector<8x96xf32> to vector<8x32xf32>
    %131 = vector.extract_strided_slice %127 {offsets = [0, 32], sizes = [8, 32], strides = [1, 1]} : vector<8x96xf32> to vector<8x32xf32>
    %132 = vector.extract_strided_slice %127 {offsets = [0, 64], sizes = [8, 32], strides = [1, 1]} : vector<8x96xf32> to vector<8x32xf32>
    %133 = arith.mulf %131, %108 : vector<8x32xf32>
    %134 = arith.mulf %130, %129 : vector<8x32xf32>
    %135 = arith.addf %133, %134 : vector<8x32xf32>
    %136 = math.tanh %135 : vector<8x32xf32>
    %137 = arith.mulf %132, %136 : vector<8x32xf32>
    %c0_28 = arith.constant 0 : index
    %c0_29 = arith.constant 0 : index
    %138 = vector.load %arg4[%c0_28, %c0_29] : memref<24x32xf32, #tpu.memory_space<vmem>>, vector<8x32xf32>
    tpu.vector_store %arg4[%c0_28, %c0_29], %137 {strides = array<i32>} : memref<24x32xf32, #tpu.memory_space<vmem>>, vector<8x32xf32>,
    %139 = vector.extract_strided_slice %116 {offsets = [8, 0], sizes = [8, 128], strides = [1, 1]} : vector<24x128xf32> to vector<8x128xf32>
    %cst_30 = arith.constant dense<0.000000e+00> : vector<8x128xf32>
    %140 = tpu.matmul %137, %3, %cst_30 {dimension_numbers = #tpu.dot_dimension_numbers<[1], [0], [0], [1], [0, 0, 1, 1], [], []>} : vector<8x32xf32>, vector<32x128xf32>, vector<8x128xf32> -> vector<8x128xf32>
    %141 = arith.addf %139, %140 : vector<8x128xf32>
    %142 = vector.extract_strided_slice %141 {offsets = [0, 0], sizes = [8, 96], strides = [1, 1]} : vector<8x128xf32> to vector<8x96xf32>
    %143 = arith.negf %142 : vector<8x96xf32>
    %144 = math.exp %143 : vector<8x96xf32>
    %cst_31 = arith.constant 1.000000e+00 : f32
    %145 = vector.broadcast %cst_31 : f32 to vector<8x96xf32>
    %146 = arith.addf %145, %144 : vector<8x96xf32>
    %147 = arith.divf %145, %146 : vector<8x96xf32>
    %148 = vector.extract_strided_slice %141 {offsets = [0, 96], sizes = [8, 32], strides = [1, 1]} : vector<8x128xf32> to vector<8x32xf32>
    %149 = math.tanh %148 : vector<8x32xf32>
    %150 = vector.extract_strided_slice %147 {offsets = [0, 0], sizes = [8, 32], strides = [1, 1]} : vector<8x96xf32> to vector<8x32xf32>
    %151 = vector.extract_strided_slice %147 {offsets = [0, 32], sizes = [8, 32], strides = [1, 1]} : vector<8x96xf32> to vector<8x32xf32>
    %152 = vector.extract_strided_slice %147 {offsets = [0, 64], sizes = [8, 32], strides = [1, 1]} : vector<8x96xf32> to vector<8x32xf32>
    %153 = arith.mulf %151, %135 : vector<8x32xf32>
    %154 = arith.mulf %150, %149 : vector<8x32xf32>
    %155 = arith.addf %153, %154 : vector<8x32xf32>
    %156 = math.tanh %155 : vector<8x32xf32>
    %157 = arith.mulf %152, %156 : vector<8x32xf32>
    %c8 = arith.constant 8 : index
    %c0_32 = arith.constant 0 : index
    %158 = vector.load %arg4[%c8, %c0_32] : memref<24x32xf32, #tpu.memory_space<vmem>>, vector<8x32xf32>
    tpu.vector_store %arg4[%c8, %c0_32], %157 {strides = array<i32>} : memref<24x32xf32, #tpu.memory_space<vmem>>, vector<8x32xf32>,
    %159 = vector.extract_strided_slice %116 {offsets = [16, 0], sizes = [8, 128], strides = [1, 1]} : vector<24x128xf32> to vector<8x128xf32>
    %cst_33 = arith.constant dense<0.000000e+00> : vector<8x128xf32>
    %160 = tpu.matmul %157, %3, %cst_33 {dimension_numbers = #tpu.dot_dimension_numbers<[1], [0], [0], [1], [0, 0, 1, 1], [], []>} : vector<8x32xf32>, vector<32x128xf32>, vector<8x128xf32> -> vector<8x128xf32>
    %161 = arith.addf %159, %160 : vector<8x128xf32>
    %162 = vector.extract_strided_slice %161 {offsets = [0, 0], sizes = [8, 96], strides = [1, 1]} : vector<8x128xf32> to vector<8x96xf32>
    %163 = arith.negf %162 : vector<8x96xf32>
    %164 = math.exp %163 : vector<8x96xf32>
    %cst_34 = arith.constant 1.000000e+00 : f32
    %165 = vector.broadcast %cst_34 : f32 to vector<8x96xf32>
    %166 = arith.addf %165, %164 : vector<8x96xf32>
    %167 = arith.divf %165, %166 : vector<8x96xf32>
    %168 = vector.extract_strided_slice %161 {offsets = [0, 96], sizes = [8, 32], strides = [1, 1]} : vector<8x128xf32> to vector<8x32xf32>
    %169 = math.tanh %168 : vector<8x32xf32>
    %170 = vector.extract_strided_slice %167 {offsets = [0, 0], sizes = [8, 32], strides = [1, 1]} : vector<8x96xf32> to vector<8x32xf32>
    %171 = vector.extract_strided_slice %167 {offsets = [0, 32], sizes = [8, 32], strides = [1, 1]} : vector<8x96xf32> to vector<8x32xf32>
    %172 = vector.extract_strided_slice %167 {offsets = [0, 64], sizes = [8, 32], strides = [1, 1]} : vector<8x96xf32> to vector<8x32xf32>
    %173 = arith.mulf %171, %155 : vector<8x32xf32>
    %174 = arith.mulf %170, %169 : vector<8x32xf32>
    %175 = arith.addf %173, %174 : vector<8x32xf32>
    %176 = math.tanh %175 : vector<8x32xf32>
    %177 = arith.mulf %172, %176 : vector<8x32xf32>
    %c16_35 = arith.constant 16 : index
    %c0_36 = arith.constant 0 : index
    %178 = vector.load %arg4[%c16_35, %c0_36] : memref<24x32xf32, #tpu.memory_space<vmem>>, vector<8x32xf32>
    tpu.vector_store %arg4[%c16_35, %c0_36], %177 {strides = array<i32>} : memref<24x32xf32, #tpu.memory_space<vmem>>, vector<8x32xf32>,
    %c0_37 = arith.constant 0 : index
    %c0_38 = arith.constant 0 : index
    %179 = vector.load %arg4[%c0_37, %c0_38] : memref<24x32xf32, #tpu.memory_space<vmem>>, vector<24x32xf32>
    %180 = vector.broadcast %8 : vector<1x32xf32> to vector<24x32xf32>
    %181 = arith.mulf %179, %180 : vector<24x32xf32>
    %182 = vector.extract_strided_slice %181 {offsets = [0, 0], sizes = [8, 32], strides = [1, 1]} : vector<24x32xf32> to vector<8x32xf32>
    %cst_39 = arith.constant dense<0.000000e+00> : vector<8xf32>
    %183 = vector.multi_reduction <add>, %182, %cst_39 [1] : vector<8x32xf32> to vector<8xf32>
    %184 = vector.shape_cast %183 : vector<8xf32> to vector<8x1xf32>
    %185 = vector.extract_strided_slice %181 {offsets = [8, 0], sizes = [8, 32], strides = [1, 1]} : vector<24x32xf32> to vector<8x32xf32>
    %cst_40 = arith.constant dense<0.000000e+00> : vector<8xf32>
    %186 = vector.multi_reduction <add>, %185, %cst_40 [1] : vector<8x32xf32> to vector<8xf32>
    %187 = vector.shape_cast %186 : vector<8xf32> to vector<8x1xf32>
    %188 = vector.extract_strided_slice %181 {offsets = [16, 0], sizes = [8, 32], strides = [1, 1]} : vector<24x32xf32> to vector<8x32xf32>
    %cst_41 = arith.constant dense<0.000000e+00> : vector<8xf32>
    %189 = vector.multi_reduction <add>, %188, %cst_41 [1] : vector<8x32xf32> to vector<8xf32>
    %190 = vector.shape_cast %189 : vector<8xf32> to vector<8x1xf32>
    %191 = tpu.concatenate %184, %187, %190 in 1 : vector<8x1xf32>, vector<8x1xf32>, vector<8x1xf32> -> vector<8x3xf32>
    %192 = vector.broadcast %9 : vector<1x1xf32> to vector<8x3xf32>
    %193 = arith.addf %191, %192 : vector<8x3xf32>
    %c0_42 = arith.constant 0 : index
    %c0_43 = arith.constant 0 : index
    %194 = vector.load %arg3[%c0_42, %c0_43] : memref<8x3xf32, #tpu.memory_space<vmem>>, vector<8x3xf32>
    tpu.vector_store %arg3[%c0_42, %c0_43], %193 {strides = array<i32>} : memref<8x3xf32, #tpu.memory_space<vmem>>, vector<8x3xf32>,
    return
  }
}

</mosaic_0001>

<bundles_post_ra>
// kernel: forward.1
= control target key start
LH: loop header
LB: loop body
LE: loop exit
PB: predicated region body
PF: predicated region fallthrough
CT: control target
= control target key end

     0   :  { %8 = vsyncpa [#allocation4], 0  ;;  %s1384_s12 = smov [#allocation3]   ;;  %s1577_s0 = inlined_call_operand.vmem [shape: f32[40,16], index: 0, kind: input, shape index: {}]   ;;  %s1578_s1 = inlined_call_operand.vmem [shape: f32[24,1], index: 1, kind: input, shape index: {}]   ;;  %s1579_s2 = inlined_call_operand.hbm [shape: f32[120,128], index: 2, kind: input, shape index: {}]   ;;  %s1580_s3 = inlined_call_operand.vmem [shape: f32[8,3], index: 3, kind: output, shape index: {}]  }
   0x1   :  { %s18_s13 = sshll.u32 %s1384_s12, 4  ;;  %s1360_s16 = scalar_lea.hbm %s1579_s2, 1920  ;;  %s19_s13 = int_to_ptr.vmem [resolvable:$true] %s18_s13 }
   0x2   :  { %p1361_p0 = scmp.ne.s32.totalorder %s1579_s2, %s1360_s16  ;;  %p1364_p1 = scmp.lt.u32.totalorder %s1360_s16, %s1579_s2 }
   0x4   :  { %p1366_p2 = pnand %p1364_p1, %p1361_p0 }
   0x6   :  { %1369 = shalt.err (!%p1366_p2)
}
   0x7   :  { %s1370_s21 = scalar_lea.vmem %s19_s13, 1920  ;;  %p1375_p4 = scmp.lt.s32.totalorder %s19_s13, %s19_s13 }
   0x8   :  { %p1371_p3 = scmp.ne.s32.totalorder %s19_s13, %s1370_s21  ;;  %p1376_p5 = scmp.lt.s32.totalorder %s1370_s21, %s1370_s21 }
   0xa   :  { %p1377_p6 = por %p1376_p5, %p1375_p4 }
   0xc   :  { %p1378_p7 = pnand %p1377_p6, %p1371_p3 }
   0xe   :  { %1381 = shalt.err (!%p1378_p7)
}
   0xf   :  { %s1385_s22 = smov 128   ;;  %s1386_s23 = smov 8  }
  0x10   :  { %24 = dma.hbm_to_vmem [thread:$0]  %s1579_s2, 1920, %s19_s13, [#allocation4], %s1385_s22, %s1385_s22, %s1386_s23  }
  0x11   :  { %1382 = dma.done.wait [#allocation4], 1920  }
  0x12   :  { %1383 = vsyncadd [#allocation4], 4294965376  ;;  %v1387_v0 = vmov 0.0|0.0   ;;  %vm1388_vm0 = vmmov 0   ;;  %v1389_v1 = vmov 0.0   ;;  %v30_v2 = vld [vmem:[#allocation3 + $0x10] sm:$0xff] }
  0x13   :  { %1225 = vmatprep.subr.bf16.mxu0 %v1387_v0  ;;  %1222 = vmatprep.subr.bf16.mxu1 %v1387_v0  ;;  %v31_v3 = vld [vmem:[#allocation3 + $0x18] sm:$0xff]  ;;  %v28_v4 = vld [vmem:[#allocation3] sm:$0xff]  ;;  %v29_v6 = vld [vmem:[#allocation3 + $0x8] sm:$0xff]  ;;  %vm57_vm1 = vcmask 130048   ;;  %s1390_s27 = smov 32   ;;  %s1391_s30 = smov 64  }
  0x14   :  { %1119 = vmatprep.mubr.msk.f32.mxu1 %vm1388_vm0, %v1389_v1  ;;  %1142 = vmatprep.mubr.msk.f32.mxu0 %vm1388_vm0, %v1389_v1  ;;  %v1431_v5 = vpack.c.bf16 %v31_v3, %v30_v2  ;;  %v32_v7 = vld [vmem:[#allocation3 + $0x20] sm:$0xff]  ;;  %v1223_v8 = vpack.c.bf16 %v29_v6, %v28_v4  ;;  %v33_v9 = vld [vmem:[#allocation3 + $0x28] sm:$0xff]  ;;  %v1453_v12 = vld [vmem:[#allocation3 + $0x70] ss:$0 sm:$0xff]  ;;  %vm163_vm2 = vcmask 261120   ;;  %vm1027_vm3 = vcmask 7168  }
  0x15   :  { %v1434_v10 = vpack.c.bf16 %v33_v9, %v32_v7  ;;  %v48_v11 = vld [vmem:[%s1577_s0] sm:$0xff]  ;;  %v49_v29 = vld [vmem:[%s1577_s0 + $0x8] sm:$0xff]  ;;  %v50_v50 = vld [vmem:[%s1577_s0 + $0x10] sm:$0xff]  ;;  %vm1029_vm4 = vcmask 15360   ;;  %vm1036_vm5 = vcmask 23552  }
  0x16   :  { %1227 = vmatpush3.bf16.msra.mxu0 %v1431_v5  ;;  %1224 = vmatpush3.bf16.msra.mxu1 %v1223_v8 }
  0x17   :  { %1228 = vmatprep.subr.bf16.mxu0 %v1387_v0  ;;  %1255 = vmatprep.subr.bf16.mxu1 %v1387_v0 }
  0x19   :  { %1120 = vmatmul.mubr.msk.f32.vlgmr.msra.gmra.mrb[0].mxu1 %vm57_vm1, %v48_v11  ;;  %v51_v11 = vld [vmem:[%s1577_s0 + $0x18] sm:$0xff] }
  0x1a   :  { %1230 = vmatpush3.bf16.msra.mxu0 %v1434_v10  ;;  %1122 = vmatprep.mubr.msk.f32.mxu1 %vm1388_vm0, %v1389_v1 }
  0x1b   :  { %1231 = vmatprep.subr.bf16.mxu0 %v1387_v0 }
  0x1d   :  { %1143 = vmatmul.mubr.f32.vlgmr.msra.gmra.mrb[0].mxu0 %v1389_v1  ;;  %1123 = vmatmul.mubr.msk.f32.gmra.mrb[2].mxu1 %vm57_vm1, %v49_v29 }
  0x1e   :  { %1233 = vmatpush3.bf16.msra.mxu0 %v1431_v5  ;;  %1153 = vmatprep.mubr.msk.f32.mxu0 %vm1388_vm0, %v1389_v1 }
  0x1f   :  { %1234 = vmatprep.subr.bf16.mxu0 %v1387_v0  ;;  %1125 = vmatprep.mubr.msk.f32.mxu1 %vm1388_vm0, %v1389_v1 }
  0x21   :  { %1126 = vmatmul.mubr.msk.f32.gmra.mrb[4].mxu1 %vm57_vm1, %v50_v50 }
  0x22   :  { %1236 = vmatpush3.bf16.msra.mxu0 %v1434_v10  ;;  %1128 = vmatprep.mubr.msk.f32.mxu1 %vm1388_vm0, %v1389_v1 }
  0x23   :  { %1237 = vmatprep.subr.bf16.mxu0 %v1387_v0 }
  0x25   :  { %1129 = vmatmul.mubr.msk.f32.gmra.mrb[6].mxu1 %vm57_vm1, %v51_v11 }
  0x26   :  { %1131 = vmatprep.mubr.msk.f32.mxu1 %vm1388_vm0, %v1389_v1 }
  0xec   :  { %v139_v13 = vpop.f32.mrb[0].mxu1 }
  0xed   :  { %v140_v14 = vadd.f32 %v1453_v12, %v139_v13  ;;  %v1121_v15 = vpop.f32.mrb[1].mxu1 }
  0xf0   :  { %v233_v16 = vpop.f32.mrb[0].mxu0  ;;  %v144_v33 = vpop.f32.mrb[2].mxu1 }
  0xf1   :  { %v237_v17 = vadd.f32 %v233_v16, %v140_v14  ;;  %v1144_v18 = vpop.f32.mrb[1].mxu0  ;;  %v1124_v34 = vpop.f32.mrb[3].mxu1  ;;  %v145_v36 = vadd.f32 %v1453_v12, %v144_v33 }
  0xf3   :  { %1296 = vtanh.f32 %v237_v17  ;;  %v1049_v20 = vmul.f32 -1.442695, %v237_v17 }
  0xf4   :  { %v149_v54 = vpop.f32.mrb[4].mxu1 }
  0xf5   :  { %1298 = vpow2.f32 %v1049_v20  ;;  %v1127_v55 = vpop.f32.mrb[5].mxu1  ;;  %v150_v57 = vadd.f32 %v1453_v12, %v149_v54 }
  0xf6   :  { %v37_v55 = vld [vmem:[#allocation3 + $0x48] sm:$0xff] }
  0xf8   :  { %v154_v16 = vpop.f32.mrb[6].mxu1 }
  0xf9   :  { %v1130_v17 = vpop.f32.mrb[7].mxu1 }
  0xfd   :  { %v1297_v19 = vpop.eup %1296 }
  0xfe   :  { %247 = vrot.lane.b32.xlu0 %v1297_v19, %s1390_s27  ;;  %v155_v19 = vadd.f32 %v1453_v12, %v154_v16 }
  0xff   :  { %v1299_v21 = vpop.eup %1298 }
 0x100   :  { %v241_v22 = vadd.f32 1.0, %v1299_v21 }
 0x102   :  { %1300 = vrcp.f32 %v241_v22 }
 0x10c   :  { %v1301_v23 = vpop.eup %1300 }
 0x10d   :  { %v245_v26 = vmul.f32 0.0, %v1301_v23 }
 0x170   :  { %v248_v24 = vpop.permute.xlu0 %247 }
 0x171   :  { %v250_v25 = vmul.f32 %v1301_v23, %v248_v24 }
 0x173   :  { %252 = vrot.lane.b32.xlu0 %v250_v25, %s1390_s27 }
 0x1e5   :  { %v253_v27 = vpop.permute.xlu0 %252 }
 0x1e6   :  { %v255_v28 = vadd.f32 %v253_v27, %v245_v26 }
 0x1e8   :  { %1302 = vtanh.f32 %v255_v28 }
 0x1f2   :  { %v1303_v30 = vpop.eup %1302 }
 0x1f3   :  { %258 = vrot.lane.b32.xlu1 %v1303_v30, %s1390_s27 }
 0x265   :  { %v259_v31 = vpop.permute.xlu1 %258 }
 0x266   :  { %v261_v32 = vmul.f32 %v1301_v23, %v259_v31  ;;  %v52_v31 = vld [vmem:[%s1577_s0 + $0x20] sm:$0xff] }
 0x267   :  { %1132 = vmatmul.mubr.msk.f32.gmra.mrb[8].mxu1 %vm57_vm1, %v52_v31 }
 0x268   :  { %263 = vrot.lane.b32.xlu1 %v261_v32, %s1391_s30  ;;  %1197 = vmatprep.mubr.msk.f32.mxu1 %vm1388_vm0, %v1389_v1 }
 0x2da   :  { %v264_v35 = vpop.permute.xlu1 %263 }
 0x2db   :  { %1154 = vmatmul.mubr.msk.f32.vlgmr.msra.gmra.mrb[2].mxu0 %vm163_vm2, %v264_v35 }
 0x2dc   :  { %1239 = vmatpush3.bf16.msra.mxu0 %v1431_v5  ;;  %1164 = vmatprep.mubr.msk.f32.mxu0 %vm1388_vm0, %v1389_v1 }
 0x2dd   :  { %1240 = vmatprep.subr.bf16.mxu0 %v1387_v0 }
 0x2e0   :  { %1242 = vmatpush3.bf16.msra.mxu0 %v1434_v10 }
 0x2e1   :  { %1243 = vmatprep.subr.bf16.mxu0 %v1387_v0 }
 0x33a   :  { %v159_v35 = vpop.f32.mrb[8].mxu1 }
 0x3ae   :  { %v333_v37 = vpop.f32.mrb[2].mxu0 }
 0x3af   :  { %v337_v38 = vadd.f32 %v333_v37, %v145_v36  ;;  %v1155_v39 = vpop.f32.mrb[3].mxu0  ;;  %v1133_v36 = vpop.f32.mrb[9].mxu1 }
 0x3b1   :  { %1304 = vtanh.f32 %v337_v38  ;;  %v1051_v41 = vmul.f32 -1.442695, %v337_v38  ;;  %v160_v38 = vadd.f32 %v1453_v12, %v159_v35 }
 0x3b3   :  { %1306 = vpow2.f32 %v1051_v41 }
 0x3bb   :  { %v1305_v40 = vpop.eup %1304 }
 0x3bc   :  { %347 = vrot.lane.b32.xlu0 %v1305_v40, %s1390_s27 }
 0x3bd   :  { %v1307_v42 = vpop.eup %1306 }
 0x3be   :  { %v341_v43 = vadd.f32 1.0, %v1307_v42 }
 0x3c0   :  { %1308 = vrcp.f32 %v341_v43 }
 0x3ca   :  { %v1309_v44 = vpop.eup %1308 }
 0x3cb   :  { %v345_v47 = vmul.f32 %v1309_v44, %v255_v28 }
 0x42e   :  { %v348_v45 = vpop.permute.xlu0 %347 }
 0x42f   :  { %v350_v46 = vmul.f32 %v1309_v44, %v348_v45 }
 0x431   :  { %352 = vrot.lane.b32.xlu1 %v350_v46, %s1390_s27 }
 0x4a3   :  { %v353_v48 = vpop.permute.xlu1 %352 }
 0x4a4   :  { %v355_v49 = vadd.f32 %v353_v48, %v345_v47 }
 0x4a6   :  { %1310 = vtanh.f32 %v355_v49 }
 0x4b0   :  { %v1311_v51 = vpop.eup %1310 }
 0x4b1   :  { %358 = vrot.lane.b32.xlu0 %v1311_v51, %s1390_s27  ;;  %v34_v51 = vld [vmem:[#allocation3 + $0x30] sm:$0xff] }
 0x523   :  { %v359_v52 = vpop.permute.xlu0 %358 }
 0x524   :  { %v361_v53 = vmul.f32 %v1309_v44, %v359_v52  ;;  %v35_v52 = vld [vmem:[#allocation3 + $0x38] sm:$0xff] }
 0x525   :  { %v1256_v54 = vpack.c.bf16 %v35_v52, %v34_v51 }
 0x526   :  { %363 = vrot.lane.b32.xlu1 %v361_v53, %s1391_s30  ;;  %v36_v53 = vld [vmem:[#allocation3 + $0x40] sm:$0xff] }
 0x527   :  { %1257 = vmatpush3.bf16.msra.mxu1 %v1256_v54 }
 0x528   :  { %1258 = vmatprep.subr.bf16.mxu1 %v1387_v0 }
 0x598   :  { %v364_v56 = vpop.permute.xlu1 %363 }
 0x599   :  { %1165 = vmatmul.mubr.msk.f32.vlgmr.msra.gmra.mrb[4].mxu0 %vm163_vm2, %v364_v56  ;;  %v1259_v56 = vpack.c.bf16 %v37_v55, %v36_v53 }
 0x59a   :  { %1245 = vmatpush3.bf16.msra.mxu0 %v1431_v5  ;;  %1175 = vmatprep.mubr.msk.f32.mxu0 %vm1388_vm0, %v1389_v1 }
 0x59b   :  { %1246 = vmatprep.subr.bf16.mxu0 %v1387_v0  ;;  %1260 = vmatpush3.bf16.msra.mxu1 %v1259_v56 }
 0x59c   :  { %1261 = vmatprep.subr.bf16.mxu1 %v1387_v0 }
 0x59e   :  { %1248 = vmatpush3.bf16.msra.mxu0 %v1434_v10 }
 0x59f   :  { %1249 = vmatprep.subr.bf16.mxu0 %v1387_v0 }
 0x66c   :  { %v433_v58 = vpop.f32.mrb[4].mxu0 }
 0x66d   :  { %v437_v59 = vadd.f32 %v433_v58, %v150_v57  ;;  %v1166_v60 = vpop.f32.mrb[5].mxu0  ;;  %v662_v58 = vld [vmem:[%s1578_s1] sm:$0xff] }
 0x66f   :  { %1312 = vtanh.f32 %v437_v59  ;;  %v1053_v62 = vmul.f32 -1.442695, %v437_v59  ;;  %v1392_v59 = vmov 0  }
 0x670   :  { %1294 = vset.pattern.permute.xlu0 %v1392_v59  ;;  %1295 = vset.pattern.permute.xlu1 %v1392_v59 }
 0x671   :  { %1314 = vpow2.f32 %v1053_v62 }
 0x679   :  { %v1313_v61 = vpop.eup %1312 }
 0x67a   :  { %447 = vrot.lane.b32.xlu0 %v1313_v61, %s1390_s27 }
 0x67b   :  { %v1315_v63 = vpop.eup %1314 }
 0x67c   :  { %v441_v2 = vadd.f32 1.0, %v1315_v63  ;;  %v1533_v63 = vld [vmem:[#allocation3 + $0x71] ss:$0 sm:$0xff] }
 0x67e   :  { %1316 = vrcp.f32 %v441_v2 }
 0x688   :  { %v1317_v3 = vpop.eup %1316 }
 0x689   :  { %v445_v7 = vmul.f32 %v1317_v3, %v355_v49 }
 0x6ec   :  { %v448_v4 = vpop.permute.xlu0 %447 }
 0x6ed   :  { %v450_v6 = vmul.f32 %v1317_v3, %v448_v4  ;;  %v1536_v4 = vld [vmem:[#allocation3 + $0x72] ss:$0 sm:$0xff] }
 0x6ef   :  { %452 = vrot.lane.b32.xlu1 %v450_v6, %s1390_s27 }
 0x761   :  { %v453_v8 = vpop.permute.xlu1 %452 }
 0x762   :  { %v455_v9 = vadd.f32 %v453_v8, %v445_v7  ;;  %v1060_v7 = vld [vmem:[#allocation3 + $0x73] ss:$0 sm:$0xff] }
 0x764   :  { %1318 = vtanh.f32 %v455_v9 }
 0x76e   :  { %v1319_v13 = vpop.eup %1318 }
 0x76f   :  { %458 = vrot.lane.b32.xlu0 %v1319_v13, %s1390_s27 }
 0x7e1   :  { %v459_v14 = vpop.permute.xlu0 %458 }
 0x7e2   :  { %v461_v15 = vmul.f32 %v1317_v3, %v459_v14 }
 0x7e4   :  { %463 = vrot.lane.b32.xlu1 %v461_v15, %s1391_s30 }
 0x856   :  { %v464_v18 = vpop.permute.xlu1 %463 }
 0x857   :  { %1176 = vmatmul.mubr.msk.f32.vlgmr.msra.gmra.mrb[6].mxu0 %vm163_vm2, %v464_v18 }
 0x858   :  { %1251 = vmatpush3.bf16.msra.mxu0 %v1431_v5  ;;  %1186 = vmatprep.mubr.msk.f32.mxu0 %vm1388_vm0, %v1389_v1 }
 0x859   :  { %1252 = vmatprep.subr.bf16.mxu0 %v1387_v0 }
 0x85c   :  { %1254 = vmatpush3.bf16.msra.mxu0 %v1434_v10 }
 0x92a   :  { %v533_v20 = vpop.f32.mrb[6].mxu0 }
 0x92b   :  { %v537_v21 = vadd.f32 %v533_v20, %v155_v19  ;;  %v1177_v22 = vpop.f32.mrb[7].mxu0 }
 0x92d   :  { %1320 = vtanh.f32 %v537_v21  ;;  %v1055_v24 = vmul.f32 -1.442695, %v537_v21 }
 0x92f   :  { %1322 = vpow2.f32 %v1055_v24 }
 0x937   :  { %v1321_v23 = vpop.eup %1320 }
 0x938   :  { %547 = vrot.lane.b32.xlu0 %v1321_v23, %s1390_s27 }
 0x939   :  { %v1323_v25 = vpop.eup %1322 }
 0x93a   :  { %v541_v5 = vadd.f32 1.0, %v1323_v25  ;;  %v663_v25 = vld [vmem:[%s1578_s1 + $0x8] sm:$0xff] }
 0x93c   :  { %1324 = vrcp.f32 %v541_v5  ;;  %v38_v5 = vld [vmem:[#allocation3 + $0x50] sm:$0xff] }
 0x946   :  { %v1325_v26 = vpop.eup %1324 }
 0x947   :  { %v545_v10 = vmul.f32 %v1325_v26, %v455_v9 }
 0x9aa   :  { %v548_v27 = vpop.permute.xlu0 %547 }
 0x9ab   :  { %v550_v28 = vmul.f32 %v1325_v26, %v548_v27  ;;  %v40_v27 = vld [vmem:[#allocation3 + $0x60] sm:$0xff] }
 0x9ad   :  { %552 = vrot.lane.b32.xlu1 %v550_v28, %s1390_s27 }
 0xa1f   :  { %v553_v29 = vpop.permute.xlu1 %552 }
 0xa20   :  { %v555_v30 = vadd.f32 %v553_v29, %v545_v10  ;;  %v41_v10 = vld [vmem:[#allocation3 + $0x68] sm:$0xff] }
 0xa21   :  { %v1265_v29 = vpack.c.bf16 %v41_v10, %v40_v27 }
 0xa22   :  { %1326 = vtanh.f32 %v555_v30 }
 0xa2c   :  { %v1327_v32 = vpop.eup %1326 }
 0xa2d   :  { %558 = vrot.lane.b32.xlu0 %v1327_v32, %s1390_s27 }
 0xa9f   :  { %v559_v33 = vpop.permute.xlu0 %558 }
 0xaa0   :  { %v561_v34 = vmul.f32 %v1325_v26, %v559_v33  ;;  %v39_v26 = vld [vmem:[#allocation3 + $0x58] sm:$0xff] }
 0xaa1   :  { %v1262_v28 = vpack.c.bf16 %v39_v26, %v38_v5 }
 0xaa2   :  { %563 = vrot.lane.b32.xlu1 %v561_v34, %s1391_s30 }
 0xb14   :  { %v564_v37 = vpop.permute.xlu1 %563 }
 0xb15   :  { %1187 = vmatmul.mubr.msk.f32.vlgmr.msra.gmra.mrb[8].mxu0 %vm163_vm2, %v564_v37 }
 0xbe8   :  { %v633_v39 = vpop.f32.mrb[8].mxu0 }
 0xbe9   :  { %v637_v40 = vadd.f32 %v633_v39, %v160_v38  ;;  %v1188_v41 = vpop.f32.mrb[9].mxu0 }
 0xbeb   :  { %1328 = vtanh.f32 %v637_v40  ;;  %v1057_v43 = vmul.f32 -1.442695, %v637_v40 }
 0xbed   :  { %1330 = vpow2.f32 %v1057_v43 }
 0xbf5   :  { %v1329_v42 = vpop.eup %1328 }
 0xbf6   :  { %647 = vrot.lane.b32.xlu0 %v1329_v42, %s1390_s27 }
 0xbf7   :  { %v1331_v44 = vpop.eup %1330 }
 0xbf8   :  { %v641_v45 = vadd.f32 1.0, %v1331_v44 }
 0xbfa   :  { %1332 = vrcp.f32 %v641_v45 }
 0xc04   :  { %v1333_v46 = vpop.eup %1332 }
 0xc05   :  { %v645_v49 = vmul.f32 %v1333_v46, %v555_v30 }
 0xc68   :  { %v648_v47 = vpop.permute.xlu0 %647 }
 0xc69   :  { %v650_v48 = vmul.f32 %v1333_v46, %v648_v47 }
 0xc6b   :  { %652 = vrot.lane.b32.xlu1 %v650_v48, %s1390_s27  ;;  %v664_v48 = vld [vmem:[%s1578_s1 + $0x10] sm:$0xff] }
 0xcdd   :  { %v653_v50 = vpop.permute.xlu1 %652 }
 0xcde   :  { %v655_v12 = vadd.f32 %v653_v50, %v645_v49 }
 0xce0   :  { %1334 = vtanh.f32 %v655_v12 }
 0xcea   :  { %v1335_v57 = vpop.eup %1334 }
 0xceb   :  { %658 = vrot.lane.b32.xlu0 %v1335_v57, %s1390_s27 }
 0xcef   :  { %667 = vperm.xlu0 %1294, %v662_v58  }
 0xd5d   :  { %v659_v60 = vpop.permute.xlu0 %658 }
 0xd5e   :  { %v661_v61 = vmul.f32 %v1333_v46, %v659_v60 }
 0xd60   :  { %700 = vrot.lane.b32.xlu1 %v661_v61, %s1391_s30 }
 0xd6e   :  { %v668_v2 = vpop.permute.xlu0 %667 }
 0xd6f   :  { %v684_v3 = vmul.f32 %v1533_v63, %v668_v2 }
 0xd71   :  { %v691_v6 = vadd.f32 %v1536_v4, %v684_v3 }
 0xd73   :  { %v698_v8 = vadd.f32 %v1060_v7, %v691_v6  ;;  %v1067_v7 = vld [vmem:[#allocation3 + $0x74] ss:$0 sm:$0xff] }
 0xdd2   :  { %v701_v62 = vpop.permute.xlu1 %700 }
 0xdd3   :  { %1198 = vmatmul.mubr.msk.f32.vlgmr.msra.gmra.mrb[10].mxu1 %vm163_vm2, %v701_v62 }
 0xdd4   :  { %1208 = vmatprep.mubr.msk.f32.mxu1 %vm1388_vm0, %v1389_v1  ;;  %1263 = vmatpush3.bf16.msra.mxu1 %v1262_v28 }
 0xdd5   :  { %1264 = vmatprep.subr.bf16.mxu1 %v1387_v0 }
 0xdd8   :  { %1266 = vmatpush3.bf16.msra.mxu1 %v1265_v29 }
 0xdd9   :  { %1267 = vmatprep.subr.bf16.mxu1 %v1387_v0 }
 0xea6   :  { %v770_v9 = vpop.f32.mrb[10].mxu1 }
 0xea7   :  { %v774_v11 = vadd.f32 %v770_v9, %v698_v8  ;;  %v1199_v13 = vpop.f32.mrb[11].mxu1 }
 0xea9   :  { %1336 = vtanh.f32 %v774_v11  ;;  %v1062_v15 = vmul.f32 -1.442695, %v774_v11 }
 0xeab   :  { %1338 = vpow2.f32 %v1062_v15 }
 0xeb3   :  { %v1337_v14 = vpop.eup %1336 }
 0xeb4   :  { %784 = vrot.lane.b32.xlu1 %v1337_v14, %s1390_s27 }
 0xeb5   :  { %v1339_v16 = vpop.eup %1338 }
 0xeb6   :  { %v778_v17 = vadd.f32 1.0, %v1339_v16 }
 0xeb8   :  { %1340 = vrcp.f32 %v778_v17 }
 0xec2   :  { %v1341_v18 = vpop.eup %1340 }
 0xec3   :  { %v782_v21 = vmul.f32 %v1341_v18, %v655_v12 }
 0xf26   :  { %v785_v19 = vpop.permute.xlu1 %784 }
 0xf27   :  { %v787_v20 = vmul.f32 %v1341_v18, %v785_v19 }
 0xf29   :  { %789 = vrot.lane.b32.xlu1 %v787_v20, %s1390_s27 }
 0xf9b   :  { %v790_v22 = vpop.permute.xlu1 %789 }
 0xf9c   :  { %v792_v23 = vadd.f32 %v790_v22, %v782_v21 }
 0xf9e   :  { %1342 = vtanh.f32 %v792_v23 }
 0xfa8   :  { %v1343_v24 = vpop.eup %1342 }
 0xfa9   :  { %795 = vrot.lane.b32.xlu0 %v1343_v24, %s1390_s27 }
 0xfad   :  { %672 = vperm.xlu0 %1294, %v663_v25  }
0x101b   :  { %v796_v30 = vpop.permute.xlu0 %795 }
0x101c   :  { %v798_v31 = vmul.f32 %v1341_v18, %v796_v30  ;;  %v47_v18 = vld [vmem:[#allocation3 + $0x75] sm:$0x1] }
0x101d   :  { %1283 = vpush %v47_v18 }
0x101e   :  { %800 = vrot.lane.b32.xlu1 %v798_v31, %s1391_s30 }
0x102c   :  { %v673_v33 = vpop.permute.xlu0 %672 }
0x102d   :  { %v685_v34 = vmul.f32 %v1533_v63, %v673_v33 }
0x102f   :  { %v692_v35 = vadd.f32 %v1536_v4, %v685_v34 }
0x104e   :  { %s1284_s1 = spop %1283 }
0x104f   :  { %v1033_v25 = vstv %s1284_s1 }
0x1090   :  { %v801_v32 = vpop.permute.xlu1 %800 }
0x1091   :  { %803 = vst.msk [vmem:[#allocation2] sm:$0xff] %vm163_vm2, %v801_v32  ;;  %1209 = vmatmul.mubr.msk.f32.vlgmr.msra.gmra.mrb[12].mxu1 %vm163_vm2, %v801_v32 }
0x1092   :  { %1269 = vmatpush3.bf16.msra.mxu1 %v1262_v28  ;;  %1219 = vmatprep.mubr.msk.f32.mxu1 %vm1388_vm0, %v1389_v1 }
0x1093   :  { %1270 = vmatprep.subr.bf16.mxu1 %v1387_v0 }
0x1096   :  { %1272 = vmatpush3.bf16.msra.mxu1 %v1265_v29 }
0x1098   :  { %v1008_v8 = vld [vmem:[#allocation2] sm:$0xff] }
0x1099   :  { %v1015_v9 = vmul.f32 %v1067_v7, %v1008_v8 }
0x109b   :  { %v1018_v11 = vsel %vm163_vm2, %v1015_v9, 0.0 }
0x1164   :  { %v872_v36 = vpop.f32.mrb[12].mxu1 }
0x1165   :  { %v876_v37 = vadd.f32 %v872_v36, %v692_v35  ;;  %v1210_v38 = vpop.f32.mrb[13].mxu1 }
0x1167   :  { %1344 = vtanh.f32 %v876_v37  ;;  %v1064_v40 = vmul.f32 -1.442695, %v876_v37 }
0x1169   :  { %1346 = vpow2.f32 %v1064_v40 }
0x1171   :  { %v1345_v39 = vpop.eup %1344 }
0x1172   :  { %886 = vrot.lane.b32.xlu1 %v1345_v39, %s1390_s27 }
0x1173   :  { %v1347_v41 = vpop.eup %1346 }
0x1174   :  { %v880_v42 = vadd.f32 1.0, %v1347_v41 }
0x1176   :  { %1348 = vrcp.f32 %v880_v42 }
0x1180   :  { %v1349_v1 = vpop.eup %1348 }
0x1181   :  { %v884_v44 = vmul.f32 %v1349_v1, %v792_v23 }
0x11e4   :  { %v887_v0 = vpop.permute.xlu1 %886 }
0x11e5   :  { %v889_v43 = vmul.f32 %v1349_v1, %v887_v0 }
0x11e7   :  { %891 = vrot.lane.b32.xlu0 %v889_v43, %s1390_s27 }
0x1259   :  { %v892_v45 = vpop.permute.xlu0 %891 }
0x125a   :  { %v894_v46 = vadd.f32 %v892_v45, %v884_v44 }
0x125c   :  { %1350 = vtanh.f32 %v894_v46 }
0x1266   :  { %v1351_v47 = vpop.eup %1350 }
0x1267   :  { %897 = vrot.lane.b32.xlu1 %v1351_v47, %s1390_s27 }
0x126b   :  { %677 = vperm.xlu1 %1295, %v664_v48  }
0x12d9   :  { %v898_v49 = vpop.permute.xlu1 %897 }
0x12da   :  { %v900_v50 = vmul.f32 %v1349_v1, %v898_v49 }
0x12dc   :  { %902 = vrot.lane.b32.xlu0 %v900_v50, %s1391_s30 }
0x12ea   :  { %v678_v51 = vpop.permute.xlu1 %677 }
0x12eb   :  { %v686_v52 = vmul.f32 %v1533_v63, %v678_v51 }
0x12ed   :  { %v693_v53 = vadd.f32 %v1536_v4, %v686_v52 }
0x134e   :  { %v903_v12 = vpop.permute.xlu0 %902 }
0x134f   :  { %905 = vst.msk [vmem:[#allocation2 + $0x8] sm:$0xff] %vm163_vm2, %v903_v12  ;;  %1220 = vmatmul.mubr.msk.f32.vlgmr.msra.gmra.mrb[14].mxu1 %vm163_vm2, %v903_v12 }
0x1356   :  { %v1009_v15 = vld [vmem:[#allocation2 + $0x8] sm:$0xff] }
0x1357   :  { %v1016_v16 = vmul.f32 %v1067_v7, %v1009_v15 }
0x1359   :  { %v1021_v17 = vsel %vm163_vm2, %v1016_v16, 0.0 }
0x1422   :  { %v974_v54 = vpop.f32.mrb[14].mxu1 }
0x1423   :  { %v978_v55 = vadd.f32 %v974_v54, %v693_v53  ;;  %v1221_v56 = vpop.f32.mrb[15].mxu1 }
0x1425   :  { %1352 = vtanh.f32 %v978_v55  ;;  %v1066_v58 = vmul.f32 -1.442695, %v978_v55 }
0x1427   :  { %1354 = vpow2.f32 %v1066_v58 }
0x142f   :  { %v1353_v57 = vpop.eup %1352 }
0x1430   :  { %988 = vrot.lane.b32.xlu0 %v1353_v57, %s1390_s27 }
0x1431   :  { %v1355_v59 = vpop.eup %1354 }
0x1432   :  { %v982_v60 = vadd.f32 1.0, %v1355_v59 }
0x1434   :  { %1356 = vrcp.f32 %v982_v60 }
0x143e   :  { %v1357_v61 = vpop.eup %1356 }
0x143f   :  { %v986_v63 = vmul.f32 %v1357_v61, %v894_v46 }
0x14a2   :  { %v989_v62 = vpop.permute.xlu0 %988 }
0x14a3   :  { %v991_v2 = vmul.f32 %v1357_v61, %v989_v62 }
0x14a5   :  { %993 = vrot.lane.b32.xlu1 %v991_v2, %s1390_s27 }
0x1517   :  { %v994_v3 = vpop.permute.xlu1 %993 }
0x1518   :  { %v996_v4 = vadd.f32 %v994_v3, %v986_v63 }
0x151a   :  { %1358 = vtanh.f32 %v996_v4 }
0x1524   :  { %v1359_v6 = vpop.eup %1358 }
0x1525   :  { %999 = vrot.lane.b32.xlu0 %v1359_v6, %s1390_s27 }
0x1544   :  { %1019 = vadd.xlane.f32.xlu0 %v1018_v11 }
0x1597   :  { %v1000_v13 = vpop.permute.xlu0 %999 }
0x1598   :  { %v1002_v14 = vmul.f32 %v1357_v61, %v1000_v13 }
0x159a   :  { %1004 = vrot.lane.b32.xlu1 %v1002_v14, %s1391_s30 }
0x15be   :  { %1022 = vadd.xlane.f32.xlu1 %v1021_v17 }
0x15d1   :  { %v1020_v23 = vpop.xlane.xlu0 %1019 }
0x160c   :  { %v1005_v19 = vpop.permute.xlu1 %1004 }
0x160d   :  { %1007 = vst.msk [vmem:[#allocation2 + $0x10] sm:$0xff] %vm163_vm2, %v1005_v19 }
0x1614   :  { %v1010_v20 = vld [vmem:[#allocation2 + $0x10] sm:$0xff] }
0x1615   :  { %v1017_v21 = vmul.f32 %v1067_v7, %v1010_v20 }
0x1617   :  { %v1024_v22 = vsel %vm163_vm2, %v1017_v21, 0.0 }
0x1618   :  { %1025 = vadd.xlane.f32.xlu0 %v1024_v22 }
0x164b   :  { %v1023_v24 = vpop.xlane.xlu1 %1022 }
0x164c   :  { %v1028_v5 = vsel %vm1027_vm3, %v1020_v23, %v1023_v24 }
0x16a5   :  { %v1026_v26 = vpop.xlane.xlu0 %1025 }
0x16a6   :  { %v1030_v27 = vsel %vm1029_vm4, %v1028_v5, %v1026_v26 }
0x16a7   :  { %v1035_v28 = vadd.f32 %v1033_v25, %v1030_v27 }
0x16a9   :  { %1037 = vst.msk [vmem:[%s1580_s3] sm:$0xff] %vm1036_vm5, %v1035_v28 }
0x16aa   :  { %1042 = vsyncpa [#allocation4], 1 }

</bundles_post_ra>
